<compile_context>
chip_gen: v5e
topology: v5e:2x2
jax: 0.10.0
libtpu: 0.0.40
codegen_flags: <defaults>
</compile_context>

<pallas_src>
import functools

import jax
import jax.numpy as jnp
from jax.experimental import pallas as pl
from jax.experimental.pallas import tpu as pltpu


def _round_up(n, m):
    return ((n + m - 1) // m) * m


def _policy_net_kernel(n_actions, x_ref, w1_ref, b1_ref, w2_ref, b2_ref,
                       wh_ref, bh_ref, out_ref):
    # fc1 + tanh, fc2 + tanh.  bf16 MXU operands, f32 accumulation.
    x = x_ref[...]
    h1 = jnp.tanh(
        jnp.dot(x, w1_ref[...], preferred_element_type=jnp.float32)
        + b1_ref[...])
    h2 = jnp.tanh(
        jnp.dot(h1.astype(jnp.bfloat16), w2_ref[...],
                preferred_element_type=jnp.float32)
        + b2_ref[...])

    # Fused heads: lanes [0, n_actions) = action logits, lane n_actions =
    # value, remaining lanes are zero-padded.
    fused = (jnp.dot(h2.astype(jnp.bfloat16), wh_ref[...],
                     preferred_element_type=jnp.float32)
             + bh_ref[...])

    lane = jax.lax.broadcasted_iota(jnp.int32, fused.shape, dimension=1)
    is_action = lane < n_actions

    # Masked softmax over the action lanes only.  Exact f32 divide for the
    # normalization so rows of probs sum to 1 within f32 rounding.
    logits = jnp.where(is_action, fused, jnp.float32(-jnp.inf))
    m = jnp.max(logits, axis=-1, keepdims=True)
    e = jnp.exp(logits - m)                      # padded lanes -> exp(-inf) = 0
    denom = jnp.sum(e, axis=-1, keepdims=True)
    probs = e / denom

    # Single lane-dense (tb, 128) store: probs in the action lanes, raw head
    # output (value at lane n_actions, zeros beyond) elsewhere.
    out_ref[...] = jnp.where(is_action, probs, fused)


def prepare_params(params):
    """One-time prep: fuse + lane-pad the two heads, cast weights to bf16.

    Hoisted out of the per-call path so the forward pass is a single
    jit-compiled program.
    Returns (prep_dict, n_actions).
    """
    hidden = params["w1"].shape[1]
    n_actions = params["wa"].shape[1]

    head_pad = max(128, _round_up(n_actions + 1, 128))
    wh = jnp.zeros((hidden, head_pad), jnp.float32)
    wh = wh.at[:, :n_actions].set(params["wa"])
    wh = wh.at[:, n_actions].set(params["wv"][:, 0])
    bh = jnp.zeros((1, head_pad), jnp.float32)
    bh = bh.at[:, :n_actions].set(params["ba"][0])
    bh = bh.at[:, n_actions].set(params["bv"][0, 0])

    prep = dict(
        w1=params["w1"].astype(jnp.bfloat16),
        b1=params["b1"].astype(jnp.float32),
        w2=params["w2"].astype(jnp.bfloat16),
        b2=params["b2"].astype(jnp.float32),
        wh=wh.astype(jnp.bfloat16),
        bh=bh,
    )
    return prep, n_actions


@functools.partial(jax.jit, static_argnames=("n_actions", "block_b"))
def policy_net_forward(x, prep, *, n_actions, block_b=2048):
    """x: (B, D_in) float32. prep: output of prepare_params."""
    B, d_in = x.shape
    hidden = prep["w1"].shape[1]
    head_pad = prep["wh"].shape[1]

    # Batch tiling: rows padded to a multiple of 8 (sublane) and of the tile.
    # Cap the tile so the grid has >= 2 steps when the batch allows it
    # (keeps both v7x TensorCores busy via the "parallel" axis).
    b8 = _round_up(B, 8)
    tb = min(block_b, max(8, _round_up(pl.cdiv(b8, 2), 8)))
    b_pad = _round_up(B, tb)

    xb = x.astype(jnp.bfloat16)
    if b_pad != B:
        xb = jnp.pad(xb, ((0, b_pad - B), (0, 0)))
    grid = (b_pad // tb,)

    def resident(shape):
        # Weights/biases: same block every grid step -> stay VMEM-resident.
        return pl.BlockSpec(shape, lambda i: (0, 0))

    out = pl.pallas_call(
        functools.partial(_policy_net_kernel, n_actions),
        out_shape=jax.ShapeDtypeStruct((b_pad, head_pad), jnp.float32),
        grid=grid,
        in_specs=[
            pl.BlockSpec((tb, d_in), lambda i: (i, 0)),   # x: tiled over batch
            resident((d_in, hidden)),                     # w1 (bf16)
            resident((1, hidden)),                        # b1 (f32)
            resident((hidden, hidden)),                   # w2 (bf16)
            resident((1, hidden)),                        # b2 (f32)
            resident((hidden, head_pad)),                 # fused head weight (bf16)
            resident((1, head_pad)),                      # fused head bias (f32)
        ],
        out_specs=pl.BlockSpec((tb, head_pad), lambda i: (i, 0)),
        compiler_params=pltpu.CompilerParams(
            dimension_semantics=("parallel",),
            vmem_limit_bytes=32 * 1024 * 1024),
    )(xb, prep["w1"], prep["b1"], prep["w2"], prep["b2"],
      prep["wh"], prep["bh"])

    probs = out[:B, :n_actions]
    value = out[:B, n_actions:n_actions + 1]
    return probs, value


def init_params(key, input_shape, hidden, output_shape):
    """Deterministic init mirroring nn.Linear shapes.

    PyTorch nn.Linear stores weight as (out, in); we store the transpose
    (in, out) so the kernel does x @ W + b. Biases kept 2D (1, out) for TPU.
    """
    ks = jax.random.split(key, 8)

    def lin(kw, kb, fan_in, fan_out):
        bound = 1.0 / jnp.sqrt(fan_in)
        w = jax.random.uniform(kw, (fan_in, fan_out), jnp.float32, -bound, bound)
        b = jax.random.uniform(kb, (1, fan_out), jnp.float32, -bound, bound)
        return w, b

    w1, b1 = lin(ks[0], ks[1], input_shape, hidden)
    w2, b2 = lin(ks[2], ks[3], hidden, hidden)
    wa, ba = lin(ks[4], ks[5], hidden, output_shape)
    wv, bv = lin(ks[6], ks[7], hidden, 1)
    return dict(w1=w1, b1=b1, w2=w2, b2=b2, wa=wa, ba=ba, wv=wv, bv=bv)


def reference_forward(x, p):
    h1 = jnp.tanh(x @ p["w1"] + p["b1"])
    h2 = jnp.tanh(h1 @ p["w2"] + p["b2"])
    probs = jax.nn.softmax(h2 @ p["wa"] + p["ba"], axis=-1)
    value = h2 @ p["wv"] + p["bv"]
    return probs, value


if __name__ == "__main__":
    key = jax.random.PRNGKey(0)
    k_x, k_p = jax.random.split(key)

    B, D_IN, HIDDEN, N_ACTIONS = 8, 16, 64, 4
    x = jax.random.normal(k_x, (B, D_IN), jnp.float32)
    params = init_params(k_p, D_IN, HIDDEN, N_ACTIONS)
    prep, n_actions = prepare_params(params)

    probs, value = policy_net_forward(x, prep, n_actions=n_actions)
    jax.block_until_ready((probs, value))

    ref_probs, ref_value = reference_forward(x, params)
    assert probs.shape == (B, N_ACTIONS) and value.shape == (B, 1)
    # bf16 MXU operands -> looser tolerances vs the f32 reference
    assert jnp.allclose(probs, ref_probs, atol=2e-2, rtol=2e-2)
    assert jnp.allclose(value, ref_value, atol=2e-2, rtol=2e-2)
    # exact f32 normalization inside the kernel -> rows sum to 1 tightly
    assert jnp.allclose(jnp.sum(probs, axis=-1), 1.0, atol=1e-3)

    # non-multiple-of-8 batch exercises the batch-padding path
    x5 = jax.random.normal(k_x, (5, D_IN), jnp.float32)
    p5, v5 = policy_net_forward(x5, prep, n_actions=n_actions)
    jax.block_until_ready((p5, v5))
    rp5, rv5 = reference_forward(x5, params)
    assert p5.shape == (5, N_ACTIONS) and v5.shape == (5, 1)
    assert jnp.allclose(p5, rp5, atol=2e-2, rtol=2e-2)
    assert jnp.allclose(v5, rv5, atol=2e-2, rtol=2e-2)
    assert jnp.allclose(jnp.sum(p5, axis=-1), 1.0, atol=1e-3)

    # mid-size batch exercises a multi-step ("parallel") grid + padding
    x3 = jax.random.normal(k_x, (300, D_IN), jnp.float32)
    p3, v3 = policy_net_forward(x3, prep, n_actions=n_actions)
    jax.block_until_ready((p3, v3))
    rp3, rv3 = reference_forward(x3, params)
    assert p3.shape == (300, N_ACTIONS) and v3.shape == (300, 1)
    assert jnp.allclose(p3, rp3, atol=2e-2, rtol=2e-2)
    assert jnp.allclose(v3, rv3, atol=2e-2, rtol=2e-2)
    assert jnp.allclose(jnp.sum(p3, axis=-1), 1.0, atol=1e-3)

    print("KERNEL_OK")
</pallas_src>

<mosaic_0001>
module attributes {stable_mosaic.version = 11 : i64} {
  func.func @_policy_net_kernel(%arg0: i32, %arg1: memref<8x16xbf16, #tpu.memory_space<vmem>>, %arg2: memref<16x64xbf16, #tpu.memory_space<vmem>>, %arg3: memref<1x64xf32, #tpu.memory_space<vmem>>, %arg4: memref<64x64xbf16, #tpu.memory_space<vmem>>, %arg5: memref<1x64xf32, #tpu.memory_space<vmem>>, %arg6: memref<64x128xbf16, #tpu.memory_space<vmem>>, %arg7: memref<1x128xf32, #tpu.memory_space<vmem>>, %arg8: memref<8x128xf32, #tpu.memory_space<vmem>>) attributes {dimension_semantics = [#tpu.dimension_semantics<parallel>], iteration_bounds = array<i64: 1>, scalar_prefetch = 0 : i64, scratch_operands = 0 : i64, tpu.core_type = #tpu.core_type<tc>, window_params = [{transform_indices = @transform_0, window_bounds = array<i64: 8, 16>}, {pipeline_mode = #tpu.pipeline_mode<synchronous>, transform_indices = @transform_1, window_bounds = array<i64: 16, 64>}, {pipeline_mode = #tpu.pipeline_mode<synchronous>, transform_indices = @transform_2, window_bounds = array<i64: 1, 64>}, {pipeline_mode = #tpu.pipeline_mode<synchronous>, transform_indices = @transform_3, window_bounds = array<i64: 64, 64>}, {pipeline_mode = #tpu.pipeline_mode<synchronous>, transform_indices = @transform_4, window_bounds = array<i64: 1, 64>}, {pipeline_mode = #tpu.pipeline_mode<synchronous>, transform_indices = @transform_5, window_bounds = array<i64: 64, 128>}, {pipeline_mode = #tpu.pipeline_mode<synchronous>, transform_indices = @transform_6, window_bounds = array<i64: 1, 128>}, {transform_indices = @transform_7, window_bounds = array<i64: 8, 128>}]} {
    %c0 = arith.constant 0 : index
    %c0_0 = arith.constant 0 : index
    %0 = vector.load %arg1[%c0, %c0_0] : memref<8x16xbf16, #tpu.memory_space<vmem>>, vector<8x16xbf16>
    %c0_1 = arith.constant 0 : index
    %c0_2 = arith.constant 0 : index
    %1 = vector.load %arg2[%c0_1, %c0_2] : memref<16x64xbf16, #tpu.memory_space<vmem>>, vector<16x64xbf16>
    %cst = arith.constant dense<0.000000e+00> : vector<8x64xf32>
    %2 = tpu.matmul %0, %1, %cst {dimension_numbers = #tpu.dot_dimension_numbers<[1], [0], [0], [1], [0, 0, 1, 1], [], []>} : vector<8x16xbf16>, vector<16x64xbf16>, vector<8x64xf32> -> vector<8x64xf32>
    %c0_3 = arith.constant 0 : index
    %c0_4 = arith.constant 0 : index
    %3 = vector.load %arg3[%c0_3, %c0_4] : memref<1x64xf32, #tpu.memory_space<vmem>>, vector<1x64xf32>
    %4 = vector.broadcast %3 : vector<1x64xf32> to vector<8x64xf32>
    %5 = arith.addf %2, %4 : vector<8x64xf32>
    %6 = math.tanh %5 : vector<8x64xf32>
    %7 = arith.truncf %6 : vector<8x64xf32> to vector<8x64xbf16>
    %c0_5 = arith.constant 0 : index
    %c0_6 = arith.constant 0 : index
    %8 = vector.load %arg4[%c0_5, %c0_6] : memref<64x64xbf16, #tpu.memory_space<vmem>>, vector<64x64xbf16>
    %cst_7 = arith.constant dense<0.000000e+00> : vector<8x64xf32>
    %9 = tpu.matmul %7, %8, %cst_7 {dimension_numbers = #tpu.dot_dimension_numbers<[1], [0], [0], [1], [0, 0, 1, 1], [], []>} : vector<8x64xbf16>, vector<64x64xbf16>, vector<8x64xf32> -> vector<8x64xf32>
    %c0_8 = arith.constant 0 : index
    %c0_9 = arith.constant 0 : index
    %10 = vector.load %arg5[%c0_8, %c0_9] : memref<1x64xf32, #tpu.memory_space<vmem>>, vector<1x64xf32>
    %11 = vector.broadcast %10 : vector<1x64xf32> to vector<8x64xf32>
    %12 = arith.addf %9, %11 : vector<8x64xf32>
    %13 = math.tanh %12 : vector<8x64xf32>
    %14 = arith.truncf %13 : vector<8x64xf32> to vector<8x64xbf16>
    %c0_10 = arith.constant 0 : index
    %c0_11 = arith.constant 0 : index
    %15 = vector.load %arg6[%c0_10, %c0_11] : memref<64x128xbf16, #tpu.memory_space<vmem>>, vector<64x128xbf16>
    %cst_12 = arith.constant dense<0.000000e+00> : vector<8x128xf32>
    %16 = tpu.matmul %14, %15, %cst_12 {dimension_numbers = #tpu.dot_dimension_numbers<[1], [0], [0], [1], [0, 0, 1, 1], [], []>} : vector<8x64xbf16>, vector<64x128xbf16>, vector<8x128xf32> -> vector<8x128xf32>
    %c0_13 = arith.constant 0 : index
    %c0_14 = arith.constant 0 : index
    %17 = vector.load %arg7[%c0_13, %c0_14] : memref<1x128xf32, #tpu.memory_space<vmem>>, vector<1x128xf32>
    %18 = vector.broadcast %17 : vector<1x128xf32> to vector<8x128xf32>
    %19 = arith.addf %16, %18 : vector<8x128xf32>
    %20 = tpu.iota {dimensions = array<i32: 1>} : vector<8x128xi32>
    %c4_i32 = arith.constant 4 : i32
    %21 = vector.broadcast %c4_i32 : i32 to vector<8x128xi32>
    %22 = arith.cmpi slt, %20, %21 : vector<8x128xi32>
    %cst_15 = arith.constant 0xFF800000 : f32
    %23 = vector.broadcast %cst_15 : f32 to vector<8x128xf32>
    %24 = arith.select %22, %19, %23 : vector<8x128xi1>, vector<8x128xf32>
    %cst_16 = arith.constant dense<0xFF800000> : vector<8xf32>
    %25 = vector.multi_reduction <maximumf>, %24, %cst_16 [1] : vector<8x128xf32> to vector<8xf32>
    %26 = vector.shape_cast %25 : vector<8xf32> to vector<8x1xf32>
    %27 = vector.broadcast %26 : vector<8x1xf32> to vector<8x128xf32>
    %28 = arith.subf %24, %27 : vector<8x128xf32>
    %29 = math.exp %28 : vector<8x128xf32>
    %cst_17 = arith.constant dense<0.000000e+00> : vector<8xf32>
    %30 = vector.multi_reduction <add>, %29, %cst_17 [1] : vector<8x128xf32> to vector<8xf32>
    %31 = vector.shape_cast %30 : vector<8xf32> to vector<8x1xf32>
    %32 = vector.broadcast %31 : vector<8x1xf32> to vector<8x128xf32>
    %33 = arith.divf %29, %32 : vector<8x128xf32>
    %34 = arith.select %22, %33, %19 : vector<8x128xi1>, vector<8x128xf32>
    %c0_18 = arith.constant 0 : index
    %c0_19 = arith.constant 0 : index
    %35 = vector.load %arg8[%c0_18, %c0_19] : memref<8x128xf32, #tpu.memory_space<vmem>>, vector<8x128xf32>
    tpu.vector_store %arg8[%c0_18, %c0_19], %34 {strides = array<i32>} : memref<8x128xf32, #tpu.memory_space<vmem>>, vector<8x128xf32>,
    return
  }
  func.func @transform_0(%arg0: i32) -> (i32, i32) {
    %c0_i32 = arith.constant 0 : i32
    %c0_i32_0 = arith.constant 0 : i32
    return %arg0, %c0_i32 : i32, i32
  }
  func.func @transform_1(%arg0: i32) -> (i32, i32) {
    %c0_i32 = arith.constant 0 : i32
    %c0_i32_0 = arith.constant 0 : i32
    %c0_i32_1 = arith.constant 0 : i32
    return %c0_i32, %c0_i32_0 : i32, i32
  }
  func.func @transform_2(%arg0: i32) -> (i32, i32) {
    %c0_i32 = arith.constant 0 : i32
    %c0_i32_0 = arith.constant 0 : i32
    %c0_i32_1 = arith.constant 0 : i32
    return %c0_i32, %c0_i32_0 : i32, i32
  }
  func.func @transform_3(%arg0: i32) -> (i32, i32) {
    %c0_i32 = arith.constant 0 : i32
    %c0_i32_0 = arith.constant 0 : i32
    %c0_i32_1 = arith.constant 0 : i32
    return %c0_i32, %c0_i32_0 : i32, i32
  }
  func.func @transform_4(%arg0: i32) -> (i32, i32) {
    %c0_i32 = arith.constant 0 : i32
    %c0_i32_0 = arith.constant 0 : i32
    %c0_i32_1 = arith.constant 0 : i32
    return %c0_i32, %c0_i32_0 : i32, i32
  }
  func.func @transform_5(%arg0: i32) -> (i32, i32) {
    %c0_i32 = arith.constant 0 : i32
    %c0_i32_0 = arith.constant 0 : i32
    %c0_i32_1 = arith.constant 0 : i32
    return %c0_i32, %c0_i32_0 : i32, i32
  }
  func.func @transform_6(%arg0: i32) -> (i32, i32) {
    %c0_i32 = arith.constant 0 : i32
    %c0_i32_0 = arith.constant 0 : i32
    %c0_i32_1 = arith.constant 0 : i32
    return %c0_i32, %c0_i32_0 : i32, i32
  }
  func.func @transform_7(%arg0: i32) -> (i32, i32) {
    %c0_i32 = arith.constant 0 : i32
    %c0_i32_0 = arith.constant 0 : i32
    return %arg0, %c0_i32 : i32, i32
  }
}

</mosaic_0001>

<bundles_post_ra>
// kernel: policy_net_forward.1
= control target key start
LH: loop header
LB: loop body
LE: loop exit
PB: predicated region body
PF: predicated region fallthrough
CT: control target
= control target key end

     0   :  { %12 = vsyncpa [#allocation3], 0  ;;  %s419_s0 = inlined_call_operand.vmem [shape: bf16[8,16], index: 0, kind: input, shape index: {}]   ;;  %s420_s1 = inlined_call_operand.vmem [shape: bf16[16,64], index: 1, kind: input, shape index: {}]   ;;  %s421_s2 = inlined_call_operand.vmem [shape: f32[1,64], index: 2, kind: input, shape index: {}]   ;;  %s422_s3 = inlined_call_operand.hbm [shape: bf16[64,64], index: 3, kind: input, shape index: {}]   ;;  %s423_s4 = inlined_call_operand.vmem [shape: f32[1,64], index: 4, kind: input, shape index: {}]   ;;  %s424_s5 = inlined_call_operand.hbm [shape: bf16[64,128], index: 5, kind: input, shape index: {}]   ;;  %s425_s6 = inlined_call_operand.vmem [shape: f32[1,128], index: 6, kind: input, shape index: {}]   ;;  %s426_s7 = inlined_call_operand.vmem [shape: f32[8,128], index: 7, kind: output, shape index: {}]  }
   0x1   :  { %s24_s26 = sshll.u32 %s422_s3, 4  ;;  %s25_s26 = int_to_ptr.hbm [resolvable:$true] %s24_s26 }
   0x2   :  { %13 = vsyncpa [#allocation5], 0  ;;  %s347_s27 = smov [#allocation2]   ;;  %s39_s8 = sshll.u32 %s424_s5, 4  ;;  %s40_s8 = int_to_ptr.hbm [resolvable:$true] %s39_s8 }
   0x3   :  { %s26_s28 = sshll.u32 %s347_s27, 4  ;;  %s348_s9 = smov 64   ;;  %s27_s28 = int_to_ptr.vmem [resolvable:$true] %s26_s28 }
   0x4   :  { %s349_s10 = smov 4   ;;  %s350_s11 = smov [#allocation4]  }
   0x5   :  { %32 = dma.hbm_to_vmem [thread:$0]  %s25_s26, 512, %s27_s28, [#allocation3], %s348_s9, %s348_s9, %s349_s10  }
   0x6   :  { %s41_s12 = sshll.u32 %s350_s11, 4  ;;  %s42_s12 = int_to_ptr.vmem [resolvable:$true] %s41_s12 }
   0x7   :  { %47 = dma.hbm_to_vmem [thread:$0]  %s40_s8, 512, %s42_s12, [#allocation5], %s348_s9, %s348_s9, %s349_s10  }
   0x8   :  { %343 = dma.done.wait [#allocation3], 512  }
   0x9   :  { %344 = vsyncadd [#allocation3], 4294966784 }
   0xa   :  { %345 = dma.done.wait [#allocation5], 512  }
   0xb   :  { %346 = vsyncadd [#allocation5], 4294966784  ;;  %v271_v0 = vld [vmem:[%s420_s1] sm:$0xff]  ;;  %v275_v1 = vld [vmem:[#allocation2 + $0x18] sm:$0xff]  ;;  %vm72_vm0 = vcmask 130048   ;;  %vm127_vm1 = vcmask 523264   ;;  %v198_v22 = vlaneseq }
   0xc   :  { %83 = vmatpush.bf16.msra.mxu0 %v271_v0  ;;  %v59_v2 = vld [vmem:[%s419_s0] sm:$0xf]  ;;  %135 = vmatpush.bf16.msra.mxu1 %v275_v1  ;;  %v274_v3 = vld [vmem:[#allocation2 + $0x10] sm:$0xff]  ;;  %v273_v4 = vld [vmem:[#allocation2 + $0x8] sm:$0xff] }
   0xd   :  { %v272_v5 = vld [vmem:[#allocation2] sm:$0xff]  ;;  %v279_v6 = vld [vmem:[#allocation4 + $0x18] sm:$0xff]  ;;  %v278_v13 = vld [vmem:[#allocation4 + $0x10] sm:$0xff]  ;;  %v199_v23 = vand.u32 127, %v198_v22 }
   0xe   :  { %189 = vmatpush.bf16.msra.mxu2 %v279_v6  ;;  %v284_v7 = vld [vmem:[%s421_s2] ss:$0 sm:$0xff]  ;;  %v277_v14 = vld [vmem:[#allocation4 + $0x8] sm:$0xff] }
   0xf   :  { %236 = vmatmul.msk.bf16.vlgmr.msra.gmra.mxu0 %vm72_vm0, %v59_v2  ;;  %v276_v15 = vld [vmem:[#allocation4] sm:$0xff]  ;;  %vm200_vm2 = vcmp.lt.s32.totalorder %v199_v23, 4 }
  0x10   :  { %136 = vmatpush.bf16.msra.mxu1 %v274_v3  ;;  %v285_v16 = vld [vmem:[%s423_s4] ss:$0 sm:$0xff] }
  0x11   :  { %v286_v24 = vld [vmem:[%s425_s6] ss:$0 sm:$0xff] }
  0x12   :  { %190 = vmatpush.bf16.msra.mxu2 %v278_v13 }
  0x14   :  { %137 = vmatpush.bf16.msra.mxu1 %v273_v4 }
  0x16   :  { %191 = vmatpush.bf16.msra.mxu2 %v277_v14 }
  0x18   :  { %138 = vmatpush.bf16.msra.mxu1 %v272_v5 }
  0x1a   :  { %192 = vmatpush.bf16.msra.mxu2 %v276_v15 }
  0x8c   :  { %v85_v8 = vpop.f32.mrf.mxu0 }
  0x8d   :  { %v86_v9 = vadd.f32 %v284_v7, %v85_v8 }
  0x8f   :  { %287 = vtanh.f32 %v86_v9 }
  0x94   :  { %v87_v10 = vpop.f32.mrf.mxu0 }
  0x95   :  { %v288_v11 = vpop.eup %287 }
  0x96   :  { %v90_v12 = vpack.c.bf16 %v288_v11, %v288_v11 }
  0x98   :  { %253 = vmatmul.msk.bf16.vlgmr.msra.gmra.mxu1 %vm127_vm1, %v90_v12 }
 0x115   :  { %v140_v17 = vpop.f32.mrf.mxu1 }
 0x116   :  { %v141_v18 = vadd.f32 %v285_v16, %v140_v17 }
 0x118   :  { %289 = vtanh.f32 %v141_v18 }
 0x11d   :  { %v142_v19 = vpop.f32.mrf.mxu1 }
 0x11e   :  { %v290_v20 = vpop.eup %289 }
 0x11f   :  { %v145_v21 = vpack.c.bf16 %v290_v20, %v290_v20 }
 0x121   :  { %270 = vmatmul.msk.bf16.vlgmr.msra.gmra.mxu2 %vm127_vm1, %v145_v21 }
 0x1a4   :  { %v194_v25 = vpop.f32.mrf.mxu2 }
 0x1a5   :  { %v195_v26 = vadd.f32 %v286_v24, %v194_v25 }
 0x1a7   :  { %v201_v27 = vsel %vm200_vm2, %v195_v26, -inf }
 0x1a8   :  { %202 = vmax.xlane.f32.xlu0 %v201_v27 }
 0x1ac   :  { %v196_v28 = vpop.f32.mrf.mxu2 }
 0x21b   :  { %v203_v29 = vpop.xlane.xlu0 %202 }
 0x21c   :  { %v204_v30 = vsub.f32 %v201_v27, %v203_v29 }
 0x21e   :  { %v205_v31 = vmul.f32 1.442695, %v204_v30 }
 0x220   :  { %291 = vpow2.f32 %v205_v31 }
 0x226   :  { %v292_v32 = vpop.eup %291 }
 0x227   :  { %207 = vadd.xlane.f32.xlu0 %v292_v32 }
 0x29a   :  { %v208_v33 = vpop.xlane.xlu0 %207 }
 0x29b   :  { %293 = vrcp.f32 %v208_v33  ;;  %v220_v37 = vand.u32 2147483648, %v208_v33  ;;  %v218_v39 = vand.u32 2147483647, %v208_v33  ;;  %vm214_vm4 = vweird.f32 %v208_v33 }
 0x29d   :  { %v221_v41 = vor.u32 1.1754944e-38, %v220_v37  ;;  %vm219_vm6 = vcmp.eq.f32.partialorder %v218_v39, 8.507059e+37 }
 0x2a1   :  { %v294_v34 = vpop.eup %293 }
 0x2a2   :  { %v210_v35 = vmul.f32 %v294_v34, %v208_v33  ;;  %vm215_vm3 = vweird.f32 %v294_v34 }
 0x2a3   :  { %vm216_vm5 = vmor %vm214_vm4, %vm215_vm3 }
 0x2a4   :  { %v211_v36 = vsub.f32 1.0, %v210_v35 }
 0x2a6   :  { %v212_v38 = vmul.f32 %v294_v34, %v211_v36 }
 0x2a8   :  { %v213_v40 = vadd.f32 %v294_v34, %v212_v38 }
 0x2aa   :  { %v217_v42 = vsel %vm216_vm5, %v294_v34, %v213_v40 }
 0x2ab   :  { %v222_v43 = vsel %vm219_vm6, %v221_v41, %v217_v42 }
 0x2ac   :  { %v223_v44 = vmul.f32 %v292_v32, %v222_v43 }
 0x2ae   :  { %v224_v45 = vsel %vm200_vm2, %v223_v44, %v195_v26 }
 0x2af   :  { %225 = vst [vmem:[%s426_s7] sm:$0xff] %v224_v45 }
 0x2b0   :  { %230 = vsyncpa [#allocation3], 1 }
 0x2b1   :  { %231 = vsyncpa [#allocation5], 1 }

</bundles_post_ra>
